<compile_context>
chip_gen: v6e
topology: v6e:2x2x1
jax: 0.10.0
libtpu: 0.0.40
codegen_flags: <defaults>
</compile_context>

<pallas_src>
import numpy as np
import jax
import jax.numpy as jnp
from jax.experimental import pallas as pl
from jax.experimental.pallas import tpu as pltpu


_ROLL_MATCHES_JNP = None


def _roll_matches_jnp():
    """Probe pltpu.roll's sign convention once (True if it matches jnp.roll)."""
    global _ROLL_MATCHES_JNP
    if _ROLL_MATCHES_JNP is None:
        def probe(x_ref, o_ref):
            o_ref[...] = pltpu.roll(x_ref[...], shift=1, axis=1)

        x = jax.lax.broadcasted_iota(jnp.float32, (8, 128), 1)
        y = pl.pallas_call(
            probe, out_shape=jax.ShapeDtypeStruct((8, 128), jnp.float32))(x)
        _ROLL_MATCHES_JNP = bool(np.asarray(y)[0, 0] == 127.0)
    return _ROLL_MATCHES_JNP


def _lane_roll(x, np_shift):
    """jnp.roll(x, np_shift, axis=-1) on the XLU, robust to roll sign convention."""
    n = x.shape[-1]
    s = np_shift % n
    if s == 0:
        return x
    if not _roll_matches_jnp():
        s = (n - s) % n
    return pltpu.roll(x, shift=s, axis=x.ndim - 1)


def _bitonic_stage_plan(lp):
    """Trace-time constant masks for an ascending bitonic sort of length lp.

    Returns (pmasks, tmasks, plan):
      pmasks[a]  : 1 where lane bit 2**a is 0 (partner lives at +j), else 0
      tmasks[s]  : 1 where stage s keeps the min, else 0 (keeps the max)
      plan       : list of (tmask_row, pmask_row, j) in network order
    """
    lane = np.arange(lp, dtype=np.int64)
    levels, pm_rows = [], []
    j = 1
    while j < lp:
        levels.append(j)
        pm_rows.append(((lane & j) == 0).astype(np.int32))
        j *= 2
    lvl_of = {jv: a for a, jv in enumerate(levels)}
    tm_rows, plan = [], []
    k = 2
    while k <= lp:
        j = k // 2
        while j >= 1:
            tm_rows.append(
                (((lane & j) == 0) == ((lane & k) == 0)).astype(np.int32))
            plan.append((len(tm_rows) - 1, lvl_of[j], j))
            j //= 2
        k *= 2
    return np.stack(pm_rows, axis=0), np.stack(tm_rows, axis=0), plan


def make_projections(key, c):
    """Deterministic stand-in for np.random.normal + F.normalize(p=2, dim=1)."""
    num_proj = c // 2
    proj = jax.random.normal(key, (num_proj, c), dtype=jnp.float32)
    norm = jnp.sqrt(jnp.sum(proj * proj, axis=1, keepdims=True))
    return proj / jnp.maximum(norm, 1e-12)


def swd_pallas(fake_samples, true_samples, projections, k=0):
    """Matches SWD.forward given the (pre-normalized) projection matrix."""
    del k  # unused, kept for signature parity with the PyTorch module
    _roll_matches_jnp()  # run the roll-convention probe outside kernel tracing

    n, c, h, w = true_samples.shape
    p = projections.shape[0]
    l = h * w
    lp = max(2, pl.next_power_of_2(l))   # sort length (power of 2)

    # --- batch blocking: pack enough rows per grid step to fill sublanes -----
    target_rows = 16
    bb = max(1, (target_rows + 2 * p - 1) // (2 * p))
    bb = min(bb, max(1, 256 // max(c, 1)))          # keep block-diag K modest
    while bb > 1 and 2 * bb * c * l * 4 > 4 * 1024 * 1024:
        bb -= 1                                      # VMEM budget (safe on v7x)
    bb = max(1, min(bb, n))
    nb = -(-n // bb)                                 # ceil(n / bb)
    n_pad = nb * bb
    r = 2 * bb * p                                   # sorted rows per grid step
    half = r // 2

    t = true_samples.reshape(n, c, l).astype(jnp.float32)
    f = fake_samples.reshape(n, c, l).astype(jnp.float32)
    if n_pad != n:
        # zero-padded batch elements project to all-zero rows in both halves
        # -> identical after sorting -> contribute exactly 0 to the sum
        zpad = jnp.zeros((n_pad - n, c, l), jnp.float32)
        t = jnp.concatenate([t, zpad], axis=0)
        f = jnp.concatenate([f, zpad], axis=0)

    # per grid block: channel axis carries [true b0..b_{bb-1} | fake b0..b_{bb-1}]
    tb = t.reshape(nb, bb, c, l)
    fb = f.reshape(nb, bb, c, l)
    x = jnp.concatenate([tb, fb], axis=1).reshape(nb, 2 * bb * c, l)

    proj = projections.astype(jnp.float32)
    # Block-diagonal projection: one (r, 2*bb*c) @ (2*bb*c, l) dot per step
    # yields all rows, true rows on top (row i pairs with row i + r//2).
    proj_big = jnp.kron(jnp.eye(2 * bb, dtype=jnp.float32), proj)

    pm_np, tm_np, plan = _bitonic_stage_plan(lp)
    pmasks = jnp.asarray(pm_np)          # (n_levels, lp) int32
    tmasks = jnp.asarray(tm_np)          # (n_stages, lp) int32
    n_levels, n_stages = pm_np.shape[0], tm_np.shape[0]

    # Identical +max sentinel in both halves -> pads sort to the tail of every
    # row and contribute exactly 0 to the L1 difference.
    sentinel = float(np.finfo(np.float32).max)

    def kernel(proj_ref, x_ref, pm_ref, tm_ref, out_ref):
        y = jnp.dot(proj_ref[...], x_ref[...],
                    preferred_element_type=jnp.float32)           # (r, l)
        if lp != l:
            pad = jnp.full((r, lp - l), sentinel, jnp.float32)
            y = jnp.concatenate([y, pad], axis=1)                 # (r, lp)

        # hoisted per-level partner masks (reused across stages with same j)
        pm = [jnp.broadcast_to(pm_ref[a:a + 1, :], (r, lp)) != 0
              for a in range(n_levels)]

        # fully unrolled bitonic network (lp=256 -> 36 stages)
        # TODO(synk): for large L (lp >= 2048) drive the outer k-loop with
        # lax.fori_loop + dynamic roll shifts instead of fully unrolling.
        for t_row, lvl, j in plan:
            take_min = jnp.broadcast_to(tm_ref[t_row:t_row + 1, :],
                                        (r, lp)) != 0
            y_up = _lane_roll(y, -j)          # y[(i + j) % lp]   (XLU)
            y_dn = _lane_roll(y, j)           # y[(i - j) % lp]   (XLU)
            partner = jnp.where(pm[lvl], y_up, y_dn)
            y = jnp.where(take_min,
                          jnp.minimum(y, partner),
                          jnp.maximum(y, partner))

        d = jnp.abs(y[:half, :] - y[half:, :])                    # (half, lp)
        part = jnp.sum(d, axis=1, keepdims=True)                  # (half, 1)
        out_ref[...] = jnp.sum(part, axis=0, keepdims=True)       # (1, 1)

    out = pl.pallas_call(
        kernel,
        out_shape=jax.ShapeDtypeStruct((nb, 1, 1), jnp.float32),
        grid_spec=pltpu.PrefetchScalarGridSpec(
            num_scalar_prefetch=0,
            grid=(nb,),
            in_specs=[
                pl.BlockSpec((r, 2 * bb * c), lambda g: (0, 0)),
                pl.BlockSpec((None, 2 * bb * c, l), lambda g: (g, 0, 0)),
                pl.BlockSpec((n_levels, lp), lambda g: (0, 0)),
                pl.BlockSpec((n_stages, lp), lambda g: (0, 0)),
            ],
            out_specs=pl.BlockSpec((None, 1, 1), lambda g: (g, 0, 0)),
        ),
        compiler_params=pltpu.CompilerParams(
            dimension_semantics=("parallel",)),
    )(proj_big, x, pmasks, tmasks)

    # per-block partial sums -> final mean in the wrapper (megacore-safe,
    # also avoids a single long serial f32 accumulation)
    return jnp.sum(out) / float(n * p * l)


if __name__ == "__main__":
    key = jax.random.PRNGKey(0)
    k_true, k_fake, k_proj = jax.random.split(key, 3)

    N, C, H, W = 2, 4, 16, 16
    true_samples = jax.random.normal(k_true, (N, C, H, W), dtype=jnp.float32)
    fake_samples = jax.random.normal(k_fake, (N, C, H, W), dtype=jnp.float32)
    # TODO(synk): PyTorch draws projections with np.random.normal each forward
    # call (non-deterministic); here they are deterministic in-script params.
    projections = make_projections(k_proj, C)

    result = swd_pallas(fake_samples, true_samples, projections)
    jax.block_until_ready(result)

    # plain-JAX reference for sanity
    t = true_samples.reshape(N, C, -1)
    f = fake_samples.reshape(N, C, -1)
    pt = jnp.einsum("pc,ncl->npl", projections, t)
    pf = jnp.einsum("pc,ncl->npl", projections, f)
    ref = jnp.mean(jnp.abs(jnp.sort(pt, axis=2) - jnp.sort(pf, axis=2)))

    assert np.allclose(np.asarray(result), np.asarray(ref),
                       rtol=1e-3, atol=1e-4), (float(result), float(ref))
    print("KERNEL_OK")
</pallas_src>

<mosaic_0001>
module attributes {stable_mosaic.version = 11 : i64} {
  func.func @probe(%arg0: memref<8x128xf32, #tpu.memory_space<vmem>>, %arg1: memref<8x128xf32, #tpu.memory_space<vmem>>) attributes {dimension_semantics = [], scalar_prefetch = 0 : i64, scratch_operands = 0 : i64, tpu.core_type = #tpu.core_type<tc>} {
    %c0 = arith.constant 0 : index
    %c0_0 = arith.constant 0 : index
    %0 = vector.load %arg0[%c0, %c0_0] : memref<8x128xf32, #tpu.memory_space<vmem>>, vector<8x128xf32>
    %c1_i32 = arith.constant 1 : i32
    %1 = tpu.dynamic_rotate %0 by %c1_i32 dim 1 : vector<8x128xf32>, i32 -> vector<8x128xf32>
    %c0_1 = arith.constant 0 : index
    %c0_2 = arith.constant 0 : index
    %2 = vector.load %arg1[%c0_1, %c0_2] : memref<8x128xf32, #tpu.memory_space<vmem>>, vector<8x128xf32>
    tpu.vector_store %arg1[%c0_1, %c0_2], %1 {strides = array<i32>} : memref<8x128xf32, #tpu.memory_space<vmem>>, vector<8x128xf32>,
    return
  }
}

</mosaic_0001>

<bundles_post_ra>
// kernel: tpu_custom_call.1
= control target key start
LH: loop header
LB: loop body
LE: loop exit
PB: predicated region body
PF: predicated region fallthrough
CT: control target
= control target key end

     0   :  { %6 = vsyncpa [#allocation3], 0  ;;  %s106_s0 = inlined_call_operand.hbm [shape: f32[8,128], index: 0, kind: input, shape index: {}]   ;;  %s107_s1 = inlined_call_operand.hbm [shape: f32[8,128], index: 1, kind: output, shape index: {}]  }
   0x1   :  { %7 = vsyncpa [#allocation4], 0  ;;  %s87_s6 = smov [#allocation2]  }
   0x2   :  { %s14_s7 = sshll.u32 %s87_s6, 4  ;;  %s15_s7 = int_to_ptr.vmem [resolvable:$true] %s14_s7 }
   0x3   :  { %s51_s8 = scalar_lea.vmem %s15_s7, 128  ;;  %p56_p1 = scmp.lt.s32.totalorder %s15_s7, %s15_s7 }
   0x4   :  { %p52_p0 = scmp.ne.s32.totalorder %s15_s7, %s51_s8  ;;  %p57_p2 = scmp.lt.s32.totalorder %s51_s8, %s51_s8 }
   0x6   :  { %p58_p3 = por %p57_p2, %p56_p1 }
   0x8   :  { %p59_p4 = pnand %p58_p3, %p52_p0 }
   0xa   :  { %62 = shalt.err (!%p59_p4)
}
   0xb   :  { %17 = dma.hbm_to_vmem [thread:$0]  %s106_s0, 128, %s15_s7, [#allocation3]  }
   0xc   :  { %83 = dma.done.wait [#allocation3], 128  }
   0xd   :  { %84 = vsyncadd [#allocation3], 4294967168  ;;  %v21_v0 = vld [vmem:[#allocation2] sm:$0xff]  ;;  %s88_s11 = smov 1   ;;  %s89_s12 = smov [#allocation5]  }
   0xe   :  { %22 = vrot.lane.b32.xlu0 %v21_v0, %s88_s11  ;;  %s31_s13 = sshll.u32 %s89_s12, 4  ;;  %s32_s13 = int_to_ptr.vmem [resolvable:$true] %s31_s13 }
   0xf   :  { %s63_s14 = scalar_lea.vmem %s32_s13, 128  ;;  %p68_p6 = scmp.lt.s32.totalorder %s32_s13, %s32_s13 }
  0x10   :  { %p64_p5 = scmp.ne.s32.totalorder %s32_s13, %s63_s14  ;;  %p69_p7 = scmp.lt.s32.totalorder %s63_s14, %s63_s14 }
  0x12   :  { %p70_p8 = por %p69_p7, %p68_p6 }
  0x14   :  { %p71_p9 = pnand %p70_p8, %p64_p5 }
  0x80   :  { %v23_v1 = vpop.permute.xlu0 %22 }
  0x81   :  { %24 = vst [vmem:[#allocation5] sm:$0xff] %v23_v1 }
  0x82   :  { %74 = shalt.err (!%p71_p9)
}
  0x83   :  { %34 = dma.vmem_to_hbm [thread:$0]  %s32_s13, 128, %s107_s1, [#allocation4]  }
  0x84   :  { %85 = dma.done.wait [#allocation4], 128  }
  0x85   :  { %86 = vsyncadd [#allocation4], 4294967168 }
  0x86   :  { %38 = vsyncpa [#allocation3], 1 }
  0x87   :  { %39 = vsyncpa [#allocation4], 1 }

</bundles_post_ra>
